<compile_context>
chip_gen: v5e
topology: v5e:2x2
jax: 0.10.0
libtpu: 0.0.40
codegen_flags: <defaults>
</compile_context>

<pallas_src>
import jax
import jax.numpy as jnp
from jax import lax
from jax.experimental import pallas as pl
from jax.experimental.pallas import tpu as pltpu

_LANES = 128
_SUBLANES = 8
_INNER_ROWS = 512             # rows per in-kernel accumulate chunk (256 KiB/operand)
_MAX_TILE_ROWS = 8192         # 8192 * 128 * 4 B = 4 MiB per input per grid step
_MIN_BLOCKS = 2               # aim for >= 2 balanced blocks (v7x has 2 TCs)
_VMEM_LIMIT_BYTES = 32 * 1024 * 1024


def _round_up(x, m):
    return ((x + m - 1) // m) * m


def _make_kernel(rows, tile_rows, inner_rows):
    """Build a marginLoss partial-sum kernel specialized to the static grid.

    rows / tile_rows / inner_rows are trace-time Python ints, so ragged
    last-block handling is compiled in only when it is actually needed.
    """
    num_blocks = pl.cdiv(rows, tile_rows)
    rem_last = rows - (num_blocks - 1) * tile_rows   # valid rows in last block
    ragged_last = rem_last != tile_rows
    n_chunks = tile_rows // inner_rows
    n_chunks_last = pl.cdiv(rem_last, inner_rows)

    def kernel(margin_ref, pos_ref, neg_ref, out_ref):
        lanes = pos_ref.shape[-1]
        margin = margin_ref[0]                      # f32 scalar from SMEM
        zero_acc = jnp.zeros((_SUBLANES, lanes), jnp.float32)

        def hinge(c):
            r0 = c * inner_rows
            if not isinstance(r0, int):
                r0 = pl.multiple_of(r0, inner_rows)
            p = pos_ref[pl.ds(r0, inner_rows), :].astype(jnp.float32)
            q = neg_ref[pl.ds(r0, inner_rows), :].astype(jnp.float32)
            return jnp.maximum(p - q + margin, jnp.float32(0.0))

        def fold(h):
            # (inner_rows, 128) -> (8, 128) lane-wise partial (pure VPU adds).
            return jnp.sum(
                h.reshape(inner_rows // _SUBLANES, _SUBLANES, lanes), axis=0)

        def accumulate(n_ch, body):
            if n_ch == 1:
                return body(0, zero_acc)
            return lax.fori_loop(0, n_ch, body, zero_acc)

        def fast_block():
            def body(c, acc):
                return acc + fold(hinge(c))
            return accumulate(n_chunks, body)

        def masked_block():
            # One iota per (masked) block, hoisted out of the chunk loop.
            row_ids = lax.broadcasted_iota(jnp.int32, (inner_rows, lanes), 0)

            def body(c, acc):
                h = hinge(c)
                local_rem = rem_last - c * inner_rows     # scalar-unit math
                # Keep this a select (not a multiply) so garbage NaN/Inf rows
                # of the partial block cannot propagate.
                h = jnp.where(row_ids < local_rem, h, jnp.float32(0.0))
                return acc + fold(h)
            return accumulate(n_chunks_last, body)

        if not ragged_last:
            out_ref[0] = fast_block()
        elif num_blocks == 1:
            out_ref[0] = masked_block()
        else:
            is_last = pl.program_id(0) == num_blocks - 1

            @pl.when(jnp.logical_not(is_last))
            def _():
                out_ref[0] = fast_block()

            @pl.when(is_last)
            def _():
                out_ref[0] = masked_block()

    return kernel


@jax.jit
def margin_loss(pos, neg, margin):
    assert pos.shape == neg.shape, "pos and neg must have identical shapes"
    pos_f = pos.reshape(-1)
    neg_f = neg.reshape(-1)
    n = pos_f.shape[0]
    margin_f = jnp.asarray(margin, dtype=jnp.float32)

    if n == 0:
        return jnp.zeros((), jnp.float32)

    n_main = (n // _LANES) * _LANES      # 128-aligned prefix handled by Pallas
    rows = n_main // _LANES

    # <128-element remainder (only when n % 128 != 0): tiny plain-JAX sum.
    if n_main != n:
        tail = jnp.sum(jnp.maximum(
            pos_f[n_main:].astype(jnp.float32)
            - neg_f[n_main:].astype(jnp.float32) + margin_f,
            jnp.float32(0.0)))
    else:
        tail = jnp.zeros((), jnp.float32)

    if rows == 0:
        return tail

    # Tile sizing: as large as possible (amortize per-step overhead), but
    # split into >= _MIN_BLOCKS roughly equal blocks so both v7x TensorCores
    # get work; keep rows-per-block a multiple of the inner chunk so the
    # in-kernel accumulate loop divides evenly.
    tile_rows = min(_MAX_TILE_ROWS,
                    _round_up(pl.cdiv(rows, _MIN_BLOCKS), _SUBLANES))
    if tile_rows > _INNER_ROWS:
        tile_rows = min(_MAX_TILE_ROWS, _round_up(tile_rows, _INNER_ROWS))
    inner_rows = min(_INNER_ROWS, tile_rows)
    num_blocks = pl.cdiv(rows, tile_rows)

    # When n % 128 == 0 this slice+reshape is a free bitcast; otherwise only
    # the aligned prefix is copied (never a padded copy of the full tensor).
    pos2d = pos_f[:n_main].reshape(rows, _LANES)
    neg2d = neg_f[:n_main].reshape(rows, _LANES)
    margin_arr = margin_f.reshape(1)

    kernel = _make_kernel(rows, tile_rows, inner_rows)

    partials = pl.pallas_call(
        kernel,
        out_shape=jax.ShapeDtypeStruct((num_blocks, _SUBLANES, _LANES),
                                       jnp.float32),
        grid_spec=pltpu.PrefetchScalarGridSpec(
            num_scalar_prefetch=0,
            grid=(num_blocks,),
            in_specs=[
                # margin: whole scalar in SMEM (no tiling).
                pl.BlockSpec(memory_space=pltpu.MemorySpace.SMEM),
                pl.BlockSpec((tile_rows, _LANES), lambda i: (i, 0)),
                pl.BlockSpec((tile_rows, _LANES), lambda i: (i, 0)),
            ],
            out_specs=pl.BlockSpec((1, _SUBLANES, _LANES),
                                   lambda i: (i, 0, 0)),
        ),
        compiler_params=pltpu.CompilerParams(
            dimension_semantics=("parallel",),
            vmem_limit_bytes=_VMEM_LIMIT_BYTES,
        ),
    )(margin_arr, pos2d, neg2d)

    # Final tiny reduction of per-block (8,128) partials -> scalar loss.
    return jnp.sum(partials) + tail


if __name__ == "__main__":
    key = jax.random.PRNGKey(0)
    k1, k2, k3, k4 = jax.random.split(key, 4)

    # Small score tensors consistent with the module (pos/neg score batches).
    pos = jax.random.normal(k1, (8, 32), dtype=jnp.float32)
    neg = jax.random.normal(k2, (8, 32), dtype=jnp.float32)
    margin = 1.0

    loss = jax.block_until_ready(margin_loss(pos, neg, margin))
    ref = jnp.sum(jnp.maximum(pos - neg + margin, 0.0))
    assert jnp.allclose(loss, ref, rtol=1e-5, atol=1e-5), (loss, ref)

    # Ragged case (n % 128 != 0) exercising the prefix kernel + plain-JAX tail.
    pos2 = jax.random.normal(k3, (7, 37), dtype=jnp.float32)
    neg2 = jax.random.normal(k4, (7, 37), dtype=jnp.float32)
    loss2 = jax.block_until_ready(margin_loss(pos2, neg2, 0.5))
    ref2 = jnp.sum(jnp.maximum(pos2 - neg2 + 0.5, 0.0))
    assert jnp.allclose(loss2, ref2, rtol=1e-5, atol=1e-5), (loss2, ref2)

    print("KERNEL_OK")
</pallas_src>

<mosaic_0001>
module attributes {stable_mosaic.version = 11 : i64} {
  func.func @kernel(%arg0: i32, %arg1: memref<1xf32, #tpu.memory_space<smem>>, %arg2: memref<8x128xf32, #tpu.memory_space<vmem>>, %arg3: memref<8x128xf32, #tpu.memory_space<vmem>>, %arg4: memref<1x8x128xf32, #tpu.memory_space<vmem>>) attributes {dimension_semantics = [#tpu.dimension_semantics<parallel>], iteration_bounds = array<i64: 1>, scalar_prefetch = 0 : i64, scratch_operands = 0 : i64, tpu.core_type = #tpu.core_type<tc>, window_params = [{transform_indices = @transform_0, window_bounds = array<i64: 1>}, {transform_indices = @transform_1, window_bounds = array<i64: 8, 128>}, {transform_indices = @transform_2, window_bounds = array<i64: 8, 128>}, {transform_indices = @transform_3, window_bounds = array<i64: 1, 8, 128>}]} {
    %c0 = arith.constant 0 : index
    %0 = memref.load %arg1[%c0] : memref<1xf32, #tpu.memory_space<smem>>
    %cst = arith.constant 0.000000e+00 : f32
    %1 = vector.broadcast %cst : f32 to vector<8x128xf32>
    %2 = tpu.iota {dimensions = array<i32: 0>} : vector<8x128xi32>
    %c0_0 = arith.constant 0 : index
    %c0_1 = arith.constant 0 : index
    %3 = vector.load %arg2[%c0_0, %c0_1] : memref<8x128xf32, #tpu.memory_space<vmem>>, vector<8x128xf32>
    %c0_2 = arith.constant 0 : index
    %c0_3 = arith.constant 0 : index
    %4 = vector.load %arg3[%c0_2, %c0_3] : memref<8x128xf32, #tpu.memory_space<vmem>>, vector<8x128xf32>
    %5 = arith.subf %3, %4 : vector<8x128xf32>
    %6 = vector.broadcast %0 : f32 to vector<8x128xf32>
    %7 = arith.addf %5, %6 : vector<8x128xf32>
    %cst_4 = arith.constant 0.000000e+00 : f32
    %8 = vector.broadcast %cst_4 : f32 to vector<8x128xf32>
    %9 = arith.maximumf %7, %8 : vector<8x128xf32>
    %c2_i32 = arith.constant 2 : i32
    %10 = vector.broadcast %c2_i32 : i32 to vector<8x128xi32>
    %11 = arith.cmpi slt, %2, %10 : vector<8x128xi32>
    %cst_5 = arith.constant 0.000000e+00 : f32
    %12 = vector.broadcast %cst_5 : f32 to vector<8x128xf32>
    %13 = arith.select %11, %9, %12 : vector<8x128xi1>, vector<8x128xf32>
    %14 = vector.shape_cast %13 : vector<8x128xf32> to vector<1x8x128xf32>
    %cst_6 = arith.constant dense<0.000000e+00> : vector<8x128xf32>
    %15 = vector.multi_reduction <add>, %14, %cst_6 [0] : vector<1x8x128xf32> to vector<8x128xf32>
    %16 = arith.addf %1, %15 : vector<8x128xf32>
    %c0_7 = arith.constant 0 : index
    %c0_8 = arith.constant 0 : index
    %c0_9 = arith.constant 0 : index
    %17 = vector.load %arg4[%c0_7, %c0_8, %c0_9] : memref<1x8x128xf32, #tpu.memory_space<vmem>>, vector<1x8x128xf32>
    %18 = vector.shape_cast %17 : vector<1x8x128xf32> to vector<8x128xf32>
    %19 = vector.shape_cast %16 : vector<8x128xf32> to vector<1x8x128xf32>
    tpu.vector_store %arg4[%c0_7, %c0_8, %c0_9], %19 {strides = array<i32>} : memref<1x8x128xf32, #tpu.memory_space<vmem>>, vector<1x8x128xf32>,
    return
  }
  func.func @transform_0(%arg0: i32) -> i32 {
    %c0_i32 = arith.constant 0 : i32
    %c0_i32_0 = arith.constant 0 : i32
    return %c0_i32 : i32
  }
  func.func @transform_1(%arg0: i32) -> (i32, i32) {
    %c0_i32 = arith.constant 0 : i32
    %c0_i32_0 = arith.constant 0 : i32
    return %arg0, %c0_i32 : i32, i32
  }
  func.func @transform_2(%arg0: i32) -> (i32, i32) {
    %c0_i32 = arith.constant 0 : i32
    %c0_i32_0 = arith.constant 0 : i32
    return %arg0, %c0_i32 : i32, i32
  }
  func.func @transform_3(%arg0: i32) -> (i32, i32, i32) {
    %c0_i32 = arith.constant 0 : i32
    %c0_i32_0 = arith.constant 0 : i32
    %c0_i32_1 = arith.constant 0 : i32
    return %arg0, %c0_i32, %c0_i32_0 : i32, i32, i32
  }
}

</mosaic_0001>

<bundles_post_ra>
// kernel: margin_loss.1
= control target key start
LH: loop header
LB: loop body
LE: loop exit
PB: predicated region body
PF: predicated region fallthrough
CT: control target
= control target key end

     0   :  { %v16_v0 = vlaneseq  ;;  %s65_s0 = inlined_call_operand.<no memory space> [shape: f32[1], index: 0, kind: input, shape index: {}]   ;;  %s66_s1 = inlined_call_operand.vmem [shape: f32[2,128], index: 1, kind: input, shape index: {}]   ;;  %s67_s2 = inlined_call_operand.vmem [shape: f32[2,128], index: 2, kind: input, shape index: {}]   ;;  %s68_s3 = inlined_call_operand.vmem [shape: f32[1,8,128], index: 3, kind: output, shape index: {}]  }
   0x1   :  { %v18_v1 = vld [vmem:[%s66_s1] sm:$0xff]  ;;  %v21_v3 = vstv %s65_s0 }
   0x2   :  { %v19_v2 = vld [vmem:[%s67_s2] sm:$0xff]  ;;  %v17_v4 = vshrl.u32 %v16_v0, 7 }
   0x3   :  { %v20_v5 = vsub.f32 %v18_v1, %v19_v2 }
   0x4   :  { %vm24_vm0 = vcmp.lt.s32.totalorder %v17_v4, 2 }
   0x5   :  { %v22_v6 = vadd.f32 %v21_v3, %v20_v5 }
   0x7   :  { %v23_v7 = vmax.f32 %v22_v6, 0.0 }
   0x9   :  { %v25_v8 = vsel %vm24_vm0, %v23_v7, 0.0 }
   0xa   :  { %28 = vst [vmem:[%s68_s3] sm:$0xff] %v25_v8 }

</bundles_post_ra>
